<compile_context>
chip_gen: v6e
topology: v6e:2x2x1
jax: 0.10.0
libtpu: 0.0.40
codegen_flags: <defaults>
</compile_context>

<pallas_src>
import functools

import jax
import jax.numpy as jnp
from jax.experimental import pallas as pl
from jax.experimental.pallas import tpu as pltpu


# ---------------------------------------------------------------------------
# Packed parameter layout inside one (32, 128) f32 buffer.
# Each entry: (row_stop, col_start, col_stop); rows always start at 0.
_PACK = {
    "w1": (10, 0, 5),   "b1": (10, 5, 6),
    "w2": (20, 8, 18),  "b2": (20, 18, 19),
    "w3": (30, 24, 44), "b3": (30, 44, 45),
    "w4": (1, 48, 78),  "b4": (1, 78, 79),
}
_PACK_SHAPE = (32, 128)


def _pslice(p, name):
    rows, c0, c1 = _PACK[name]
    return p[0:rows, c0:c1]


def _celu(v):
    # CELU (alpha=1) in max-form, exactly equal to the where-form:
    #   v > 0  -> exp(min(v,0)) - 1 = 0 <= v  -> v
    #   v <= 0 -> exp(v) - 1 >= v             -> exp(v) - 1
    return jnp.maximum(v, jnp.exp(jnp.minimum(v, 0.0)) - 1.0)


def _make_kernel(act_dtype):
    def house_price_kernel(x_ref, p_ref, o_ref):
        # x_ref: (5, TB) — batch on the lane axis; all intermediates lane-dense.
        x = x_ref[...].astype(act_dtype)
        p = p_ref[...]                                   # (32, 128) packed params

        def layer(h, wname, bname):
            w = _pslice(p, wname).astype(act_dtype)
            b = _pslice(p, bname)
            y = jnp.dot(w, h, preferred_element_type=jnp.float32) + b
            return _celu(y).astype(act_dtype)

        h = layer(x, "w1", "b1")                         # (10, TB)
        h = layer(h, "w2", "b2")                         # (20, TB)
        h = layer(h, "w3", "b3")                         # (30, TB)
        out = jnp.dot(_pslice(p, "w4").astype(act_dtype), h,
                      preferred_element_type=jnp.float32) + _pslice(p, "b4")
        o_ref[...] = out.astype(o_ref.dtype)             # (1, TB)

    return house_price_kernel


def _round_up(n, m):
    return ((n + m - 1) // m) * m


def pack_params(params):
    """Pack [(W (out,in), b (out,1)) x 4] (PyTorch layout) into one (32,128) f32 buffer."""
    p = jnp.zeros(_PACK_SHAPE, jnp.float32)
    names = [("w1", "b1"), ("w2", "b2"), ("w3", "b3"), ("w4", "b4")]
    for (wn, bn), (w, b) in zip(names, params):
        rw, cw0, cw1 = _PACK[wn]
        rb, cb0, cb1 = _PACK[bn]
        p = p.at[0:rw, cw0:cw1].set(w)
        p = p.at[0:rb, cb0:cb1].set(b)
    return p


def _forward_impl(x_t, packed, tb_max, min_steps, act_dtype):
    f, batch = x_t.shape
    assert f == 5

    # Batch tile: lane-dense (multiple of 128), big enough to amortize the
    # ~0.35 us per-grid-step overhead, small enough for >= min_steps grid
    # iterations (v7x megacore) and the VMEM budget.
    tb_cap = max(128, (int(tb_max) // 128) * 128)
    cdiv_b = -(-batch // max(1, int(min_steps)))
    tb = min(tb_cap, max(128, _round_up(cdiv_b, 128)))
    b_pad = _round_up(batch, tb)
    if b_pad != batch:
        x_t = jnp.pad(x_t, ((0, 0), (0, b_pad - batch)))

    grid = (b_pad // tb,)

    out_t = pl.pallas_call(
        _make_kernel(act_dtype),
        out_shape=jax.ShapeDtypeStruct((1, b_pad), jnp.float32),
        grid_spec=pltpu.PrefetchScalarGridSpec(
            num_scalar_prefetch=0,
            grid=grid,
            in_specs=[
                pl.BlockSpec((f, tb), lambda i: (0, i)),       # x tile moves with grid
                pl.BlockSpec(_PACK_SHAPE, lambda i: (0, 0)),   # params stay resident
            ],
            out_specs=pl.BlockSpec((1, tb), lambda i: (0, i)),
        ),
        compiler_params=pltpu.CompilerParams(
            dimension_semantics=("parallel",),
            vmem_limit_bytes=32 * 1024 * 1024,
        ),
    )(x_t, packed)

    return out_t[:, :batch]                                    # (1, B)


@functools.partial(jax.jit, static_argnames=("tb_max", "min_steps", "act_dtype"))
def house_price_forward_feature_major(x_t, packed_params, *, tb_max=32768,
                                      min_steps=4, act_dtype=jnp.float32):
    """Zero-transpose path: x_t is (5, B) feature-major f32.  Returns (1, B)."""
    return _forward_impl(x_t, packed_params, tb_max, min_steps, act_dtype)


@functools.partial(jax.jit, static_argnames=("tb_max", "min_steps", "act_dtype"))
def house_price_forward(x, params, *, tb_max=32768, min_steps=4,
                        act_dtype=jnp.float32):
    """Matches the PyTorch module: x (B, 5) f32 -> (B, 1) f32.

    params: list of 4 (W (out,in), b (out,1)) pairs in PyTorch layout.
    """
    packed = pack_params(params)
    out_t = _forward_impl(x.T, packed, tb_max, min_steps, act_dtype)
    return out_t.T


def init_params(key):
    """Deterministic init mirroring nn.Linear's U(-1/sqrt(fan_in), 1/sqrt(fan_in))."""
    dims = [(5, 10), (10, 20), (20, 30), (30, 1)]
    params = []
    for (fan_in, fan_out) in dims:
        key, kw, kb = jax.random.split(key, 3)
        bound = 1.0 / jnp.sqrt(jnp.float32(fan_in))
        w = jax.random.uniform(kw, (fan_out, fan_in), jnp.float32,
                               minval=-bound, maxval=bound)
        b = jax.random.uniform(kb, (fan_out, 1), jnp.float32,
                               minval=-bound, maxval=bound)
        params.append((w, b))
    return params


def reference_forward(x, params):
    h = x
    for i, (w, b) in enumerate(params):
        h = h @ w.T + b.T
        if i < len(params) - 1:
            h = jnp.where(h > 0, h, jnp.exp(jnp.minimum(h, 0.0)) - 1.0)
    return h


if __name__ == "__main__":
    key = jax.random.PRNGKey(0)
    key, kx = jax.random.split(key)

    B = 8
    x = jax.random.normal(kx, (B, 5), dtype=jnp.float32)
    params = init_params(key)

    out = house_price_forward(x, params)
    out = jax.block_until_ready(out)

    ref = reference_forward(x, params)
    assert out.shape == (B, 1)
    assert jnp.allclose(out, ref, atol=1e-5, rtol=1e-5)

    # Zero-transpose feature-major path on the same data.
    packed = pack_params(params)
    out_fm = jax.block_until_ready(
        house_price_forward_feature_major(x.T, packed))
    assert out_fm.shape == (1, B)
    assert jnp.allclose(out_fm, ref.T, atol=1e-5, rtol=1e-5)

    print("KERNEL_OK")
</pallas_src>

<mosaic_0001>
module attributes {stable_mosaic.version = 11 : i64} {
  func.func @house_price_kernel(%arg0: i32, %arg1: memref<5x128xf32, #tpu.memory_space<vmem>>, %arg2: memref<32x128xf32, #tpu.memory_space<vmem>>, %arg3: memref<1x128xf32, #tpu.memory_space<vmem>>) attributes {dimension_semantics = [#tpu.dimension_semantics<parallel>], iteration_bounds = array<i64: 1>, scalar_prefetch = 0 : i64, scratch_operands = 0 : i64, tpu.core_type = #tpu.core_type<tc>, window_params = [{transform_indices = @transform_0, window_bounds = array<i64: 5, 128>}, {pipeline_mode = #tpu.pipeline_mode<synchronous>, transform_indices = @transform_1, window_bounds = array<i64: 32, 128>}, {transform_indices = @transform_2, window_bounds = array<i64: 1, 128>}]} {
    %c0 = arith.constant 0 : index
    %c0_0 = arith.constant 0 : index
    %0 = vector.load %arg1[%c0, %c0_0] : memref<5x128xf32, #tpu.memory_space<vmem>>, vector<5x128xf32>
    %c0_1 = arith.constant 0 : index
    %c0_2 = arith.constant 0 : index
    %1 = vector.load %arg2[%c0_1, %c0_2] : memref<32x128xf32, #tpu.memory_space<vmem>>, vector<32x128xf32>
    %2 = vector.extract_strided_slice %1 {offsets = [0, 0], sizes = [10, 5], strides = [1, 1]} : vector<32x128xf32> to vector<10x5xf32>
    %3 = vector.extract_strided_slice %1 {offsets = [0, 5], sizes = [10, 1], strides = [1, 1]} : vector<32x128xf32> to vector<10x1xf32>
    %cst = arith.constant dense<0.000000e+00> : vector<10x128xf32>
    %4 = tpu.matmul %2, %0, %cst {dimension_numbers = #tpu.dot_dimension_numbers<[1], [0], [0], [1], [0, 0, 1, 1], [], []>} : vector<10x5xf32>, vector<5x128xf32>, vector<10x128xf32> -> vector<10x128xf32>
    %5 = vector.broadcast %3 : vector<10x1xf32> to vector<10x128xf32>
    %6 = arith.addf %4, %5 : vector<10x128xf32>
    %cst_3 = arith.constant 0.000000e+00 : f32
    %7 = vector.broadcast %cst_3 : f32 to vector<10x128xf32>
    %8 = arith.minimumf %6, %7 : vector<10x128xf32>
    %9 = math.exp %8 : vector<10x128xf32>
    %cst_4 = arith.constant 1.000000e+00 : f32
    %10 = vector.broadcast %cst_4 : f32 to vector<10x128xf32>
    %11 = arith.subf %9, %10 : vector<10x128xf32>
    %12 = arith.maximumf %6, %11 : vector<10x128xf32>
    %13 = vector.extract_strided_slice %1 {offsets = [0, 8], sizes = [20, 10], strides = [1, 1]} : vector<32x128xf32> to vector<20x10xf32>
    %14 = vector.extract_strided_slice %1 {offsets = [0, 18], sizes = [20, 1], strides = [1, 1]} : vector<32x128xf32> to vector<20x1xf32>
    %cst_5 = arith.constant dense<0.000000e+00> : vector<20x128xf32>
    %15 = tpu.matmul %13, %12, %cst_5 {dimension_numbers = #tpu.dot_dimension_numbers<[1], [0], [0], [1], [0, 0, 1, 1], [], []>} : vector<20x10xf32>, vector<10x128xf32>, vector<20x128xf32> -> vector<20x128xf32>
    %16 = vector.broadcast %14 : vector<20x1xf32> to vector<20x128xf32>
    %17 = arith.addf %15, %16 : vector<20x128xf32>
    %cst_6 = arith.constant 0.000000e+00 : f32
    %18 = vector.broadcast %cst_6 : f32 to vector<20x128xf32>
    %19 = arith.minimumf %17, %18 : vector<20x128xf32>
    %20 = math.exp %19 : vector<20x128xf32>
    %cst_7 = arith.constant 1.000000e+00 : f32
    %21 = vector.broadcast %cst_7 : f32 to vector<20x128xf32>
    %22 = arith.subf %20, %21 : vector<20x128xf32>
    %23 = arith.maximumf %17, %22 : vector<20x128xf32>
    %24 = vector.extract_strided_slice %1 {offsets = [0, 24], sizes = [30, 20], strides = [1, 1]} : vector<32x128xf32> to vector<30x20xf32>
    %25 = vector.extract_strided_slice %1 {offsets = [0, 44], sizes = [30, 1], strides = [1, 1]} : vector<32x128xf32> to vector<30x1xf32>
    %cst_8 = arith.constant dense<0.000000e+00> : vector<30x128xf32>
    %26 = tpu.matmul %24, %23, %cst_8 {dimension_numbers = #tpu.dot_dimension_numbers<[1], [0], [0], [1], [0, 0, 1, 1], [], []>} : vector<30x20xf32>, vector<20x128xf32>, vector<30x128xf32> -> vector<30x128xf32>
    %27 = vector.broadcast %25 : vector<30x1xf32> to vector<30x128xf32>
    %28 = arith.addf %26, %27 : vector<30x128xf32>
    %cst_9 = arith.constant 0.000000e+00 : f32
    %29 = vector.broadcast %cst_9 : f32 to vector<30x128xf32>
    %30 = arith.minimumf %28, %29 : vector<30x128xf32>
    %31 = math.exp %30 : vector<30x128xf32>
    %cst_10 = arith.constant 1.000000e+00 : f32
    %32 = vector.broadcast %cst_10 : f32 to vector<30x128xf32>
    %33 = arith.subf %31, %32 : vector<30x128xf32>
    %34 = arith.maximumf %28, %33 : vector<30x128xf32>
    %35 = vector.extract_strided_slice %1 {offsets = [0, 48], sizes = [1, 30], strides = [1, 1]} : vector<32x128xf32> to vector<1x30xf32>
    %cst_11 = arith.constant dense<0.000000e+00> : vector<1x128xf32>
    %36 = tpu.matmul %35, %34, %cst_11 {dimension_numbers = #tpu.dot_dimension_numbers<[1], [0], [0], [1], [0, 0, 1, 1], [], []>} : vector<1x30xf32>, vector<30x128xf32>, vector<1x128xf32> -> vector<1x128xf32>
    %37 = vector.extract_strided_slice %1 {offsets = [0, 78], sizes = [1, 1], strides = [1, 1]} : vector<32x128xf32> to vector<1x1xf32>
    %38 = vector.broadcast %37 : vector<1x1xf32> to vector<1x128xf32>
    %39 = arith.addf %36, %38 : vector<1x128xf32>
    %c0_12 = arith.constant 0 : index
    %c0_13 = arith.constant 0 : index
    %40 = vector.load %arg3[%c0_12, %c0_13] : memref<1x128xf32, #tpu.memory_space<vmem>>, vector<1x128xf32>
    tpu.vector_store %arg3[%c0_12, %c0_13], %39 {strides = array<i32>} : memref<1x128xf32, #tpu.memory_space<vmem>>, vector<1x128xf32>,
    return
  }
  func.func @transform_0(%arg0: i32) -> (i32, i32) {
    %c0_i32 = arith.constant 0 : i32
    %c0_i32_0 = arith.constant 0 : i32
    return %c0_i32, %arg0 : i32, i32
  }
  func.func @transform_1(%arg0: i32) -> (i32, i32) {
    %c0_i32 = arith.constant 0 : i32
    %c0_i32_0 = arith.constant 0 : i32
    %c0_i32_1 = arith.constant 0 : i32
    return %c0_i32, %c0_i32_0 : i32, i32
  }
  func.func @transform_2(%arg0: i32) -> (i32, i32) {
    %c0_i32 = arith.constant 0 : i32
    %c0_i32_0 = arith.constant 0 : i32
    return %c0_i32, %arg0 : i32, i32
  }
}

</mosaic_0001>

<bundles_post_ra>
// kernel: house_price_forward.1
= control target key start
LH: loop header
LB: loop body
LE: loop exit
PB: predicated region body
PF: predicated region fallthrough
CT: control target
= control target key end

     0   :  { %vm31_vm0 = vcmask 1044480   ;;  %vm26_vm1 = vcmask 39936   ;;  %v594_v3 = vmov 5   ;;  %v596_v5 = vmov 0.0   ;;  %s599_s17 = smov 104   ;;  %s672_s0 = inlined_call_operand.vmem [shape: f32[5,128], index: 0, kind: input, shape index: {}]   ;;  %s673_s1 = inlined_call_operand.vmem [shape: f32[32,128], index: 1, kind: input, shape index: {}]   ;;  %s674_s2 = inlined_call_operand.vmem [shape: f32[1,128], index: 2, kind: output, shape index: {}]  }
   0x1   :  { %v11_v0 = vld [vmem:[%s672_s0] sm:$0x1f]  ;;  %v629_v2 = vld [vmem:[%s673_s1 + $0x8] sm:$0xff]  ;;  %569 = vset.pattern.permute.xlu0 %v594_v3  ;;  %s595_s0 = smov 120   ;;  %v14_v4 = vld [vmem:[%s673_s1 + $0x10] sm:$0xff]  ;;  %vm597_vm2 = vmmov 0  }
   0x2   :  { %v624_v1 = vld [vmem:[%s673_s1] sm:$0xff]  ;;  %519 = vmatprep.subr.msk.mxu1 %vm31_vm0, %v11_v0  ;;  %23 = vperm.xlu0 %569, %v629_v2   ;;  %v598_v6 = vmov 18   ;;  %v15_v7 = vld [vmem:[%s673_s1 + $0x18] sm:$0xff]  ;;  %vm146_vm3 = vcmask 1041408   ;;  %vm139_vm4 = vcmask 80896   ;;  %vm270_vm5 = vcmask 162816  }
   0x3   :  { %521 = vmatprep.mubr.msk.f32.mxu1 %vm26_vm1, %v624_v1  ;;  %520 = vmatpush3.msk.msra.mxu1 %vm31_vm0, %v11_v0  ;;  %v600_v30 = vmov 44   ;;  %s601_s1 = smov 80   ;;  %vm279_vm6 = vcmask 1043456   ;;  %v602_v59 = vmov 78   ;;  %vm397_vm7 = vcmask 1045504  }
   0x4   :  { %522 = vmatmul.mubr.msk.f32.vlgmr.msra.gmra.mxu1 %vm26_vm1, %v629_v2  ;;  %133 = vrot.lane.b32.xlu1 %v624_v1, %s595_s0  ;;  %vm394_vm8 = vcmask 244736  }
   0x5   :  { %524 = vmatprep.subr.mxu1 %v596_v5  ;;  %528 = vmatprep.mubr.msk.f32.mxu1 %vm597_vm2, %v596_v5 }
   0x6   :  { %18 = vperm.xlu0 %569, %v624_v1   ;;  %570 = vset.pattern.permute.xlu1 %v598_v6 }
   0x8   :  { %135 = vrot.lane.b32.xlu1 %v629_v2, %s595_s0 }
   0xa   :  { %137 = vrot.lane.b32.xlu0 %v14_v4, %s595_s0 }
   0xb   :  { %571 = vset.pattern.permute.xlu0 %v598_v6 }
   0xc   :  { %130 = vperm.xlu1 %570, %v14_v4  }
   0xe   :  { %125 = vperm.xlu0 %571, %v629_v2  }
  0x10   :  { %121 = vperm.xlu1 %570, %v624_v1  }
  0x12   :  { %264 = vrot.lane.b32.xlu0 %v629_v2, %s599_s17 }
  0x13   :  { %573 = vset.pattern.permute.xlu0 %v600_v30 }
  0x14   :  { %262 = vrot.lane.b32.xlu1 %v624_v1, %s599_s17 }
  0x15   :  { %572 = vset.pattern.permute.xlu1 %v600_v30 }
  0x16   :  { %268 = vrot.lane.b32.xlu0 %v15_v7, %s599_s17 }
  0x18   :  { %266 = vrot.lane.b32.xlu1 %v14_v4, %s599_s17 }
  0x1a   :  { %254 = vperm.xlu0 %573, %v14_v4  }
  0x1c   :  { %259 = vperm.xlu1 %572, %v15_v7  }
  0x1e   :  { %392 = vrot.lane.b32.xlu0 %v624_v1, %s601_s1 }
  0x1f   :  { %575 = vset.pattern.permute.xlu0 %v602_v59 }
  0x20   :  { %250 = vperm.xlu1 %572, %v629_v2  }
  0x24   :  { %246 = vperm.xlu1 %572, %v624_v1  }
  0x28   :  { %574 = vset.pattern.permute.xlu1 %v602_v59 }
  0x29   :  { %389 = vperm.xlu1 %574, %v624_v1  }
  0x76   :  { %v134_v23 = vpop.permute.xlu1 %133 }
  0x7a   :  { %v136_v25 = vpop.permute.xlu1 %135 }
  0x7d   :  { %v24_v8 = vpop.permute.xlu0 %23 }
  0x81   :  { %v19_v11 = vpop.permute.xlu0 %18 }
  0x85   :  { %v138_v26 = vpop.permute.xlu0 %137 }
  0x87   :  { %v131_v27 = vpop.permute.xlu1 %130 }
  0x89   :  { %v126_v34 = vpop.permute.xlu0 %125 }
  0x8b   :  { %v122_v28 = vpop.permute.xlu1 %121 }
  0x8d   :  { %v265_v55 = vpop.permute.xlu0 %264 }
  0x8f   :  { %v263_v29 = vpop.permute.xlu1 %262 }
  0x90   :  { %543 = vmatprep.mubr.msk.f32.mxu0 %vm270_vm5, %v263_v29 }
  0x91   :  { %v269_v58 = vpop.permute.xlu0 %268 }
  0x93   :  { %v267_v57 = vpop.permute.xlu1 %266 }
  0x95   :  { %v255_v7 = vpop.permute.xlu0 %254 }
  0x97   :  { %v260_v60 = vpop.permute.xlu1 %259 }
  0x99   :  { %v393_v29 = vpop.permute.xlu0 %392 }
  0x9b   :  { %v251_v61 = vpop.permute.xlu1 %250 }
  0x9f   :  { %v247_v63 = vpop.permute.xlu1 %246 }
  0xa4   :  { %v390_v30 = vpop.permute.xlu1 %389 }
  0xc4   :  { %v523_v9 = vpop.f32.mrf.mxu1 }
  0xc5   :  { %v107_v10 = vadd.f32 %v523_v9, %v24_v8 }
  0xc6   :  { %v101_v12 = vpop.f32.mrf.mxu1 }
  0xc7   :  { %v111_v13 = vmin.f32 %v107_v10, 0.0  ;;  %v102_v14 = vadd.f32 %v101_v12, %v19_v11 }
  0xc9   :  { %v114_v15 = vmul.f32 1.442695, %v111_v13  ;;  %v110_v16 = vmin.f32 %v102_v14, 0.0 }
  0xcb   :  { %576 = vpow2.f32 %v114_v15  ;;  %v112_v17 = vmul.f32 1.442695, %v110_v16 }
  0xcd   :  { %578 = vpow2.f32 %v112_v17 }
  0xd8   :  { %v577_v18 = vpop.eup %576 }
  0xd9   :  { %v480_v19 = vadd.f32 -1.0, %v577_v18 }
  0xda   :  { %v579_v20 = vpop.eup %578 }
  0xdb   :  { %v119_v21 = vmax.f32 %v107_v10, %v480_v19  ;;  %v479_v22 = vadd.f32 -1.0, %v579_v20 }
  0xdd   :  { %v118_v24 = vmax.f32 %v102_v14, %v479_v22  ;;  %525 = vmatpush3.msk.msra.mxu1 %vm146_vm3, %v119_v21 }
  0xde   :  { %526 = vmatprep.subr.mxu1 %v596_v5 }
  0xdf   :  { %527 = vmatpush3.msra.mxu1 %v118_v24 }
  0xe0   :  { %529 = vmatmul.mubr.msk.f32.vlgmr.msra.gmra.mxu1 %vm139_vm4, %v134_v23 }
  0xe1   :  { %531 = vmatprep.mubr.msk.f32.mxu1 %vm597_vm2, %v596_v5 }
  0xe4   :  { %532 = vmatmul.mubr.msk.f32.gmra.mxu1 %vm139_vm4, %v136_v25 }
  0xe5   :  { %534 = vmatprep.mubr.msk.f32.mxu1 %vm597_vm2, %v596_v5 }
  0xe8   :  { %535 = vmatmul.mubr.msk.f32.gmra.mxu1 %vm139_vm4, %v138_v26 }
 0x1a0   :  { %v216_v31 = vpop.f32.mrf.mxu1 }
 0x1a1   :  { %v217_v32 = vadd.f32 %v216_v31, %v122_v28 }
 0x1a2   :  { %v530_v33 = vpop.f32.mrf.mxu1 }
 0x1a3   :  { %v230_v37 = vmin.f32 %v217_v32, 0.0 }
 0x1a4   :  { %v221_v35 = vpop.f32.mrf.mxu1 }
 0x1a5   :  { %v222_v36 = vadd.f32 %v221_v35, %v126_v34  ;;  %v233_v43 = vmul.f32 1.442695, %v230_v37 }
 0x1a6   :  { %v533_v38 = vpop.f32.mrf.mxu1 }
 0x1a7   :  { %v231_v39 = vmin.f32 %v222_v36, 0.0 }
 0x1a8   :  { %v226_v40 = vpop.f32.mrf.mxu1 }
 0x1a9   :  { %v235_v41 = vmul.f32 1.442695, %v231_v39  ;;  %v227_v42 = vadd.f32 %v226_v40, %v131_v27 }
 0x1aa   :  { %v536_v44 = vpop.f32.mrf.mxu1 }
 0x1ab   :  { %v232_v45 = vmin.f32 %v227_v42, 0.0  ;;  %580 = vpow2.f32 %v235_v41 }
 0x1ac   :  { %582 = vpow2.f32 %v233_v43 }
 0x1ad   :  { %v237_v46 = vmul.f32 1.442695, %v232_v45 }
 0x1af   :  { %584 = vpow2.f32 %v237_v46 }
 0x1b8   :  { %v581_v47 = vpop.eup %580 }
 0x1b9   :  { %v583_v48 = vpop.eup %582  ;;  %v486_v50 = vadd.f32 -1.0, %v581_v47 }
 0x1ba   :  { %v485_v52 = vadd.f32 -1.0, %v583_v48 }
 0x1bb   :  { %v243_v54 = vmax.f32 %v222_v36, %v486_v50 }
 0x1bc   :  { %v585_v49 = vpop.eup %584  ;;  %v242_v56 = vmax.f32 %v217_v32, %v485_v52 }
 0x1bd   :  { %v487_v51 = vadd.f32 -1.0, %v585_v49 }
 0x1bf   :  { %v244_v53 = vmax.f32 %v227_v42, %v487_v51 }
 0x1c1   :  { %537 = vmatprep.subr.msk.mxu0 %vm279_vm6, %v244_v53 }
 0x1c2   :  { %538 = vmatpush3.msk.msra.mxu0 %vm279_vm6, %v244_v53 }
 0x1c3   :  { %539 = vmatprep.subr.mxu0 %v243_v54 }
 0x1c4   :  { %540 = vmatpush3.msra.mxu0 %v243_v54 }
 0x1c5   :  { %541 = vmatprep.subr.mxu0 %v242_v56 }
 0x1c6   :  { %542 = vmatpush3.msra.mxu0 %v242_v56 }
 0x1c7   :  { %544 = vmatmul.mubr.msk.f32.vlgmr.msra.gmra.mxu0 %vm270_vm5, %v265_v55  ;;  %549 = vmatprep.subr.mxu0 %v596_v5 }
 0x1c8   :  { %546 = vmatprep.mubr.msk.f32.mxu0 %vm270_vm5, %v267_v57 }
 0x1cb   :  { %547 = vmatmul.mubr.msk.f32.gmra.mxu0 %vm270_vm5, %v269_v58 }
 0x1cc   :  { %557 = vmatprep.mubr.msk.f32.mxu0 %vm597_vm2, %v596_v5 }
 0x287   :  { %v545_v62 = vpop.f32.mrf.mxu0 }
 0x288   :  { %v355_v0 = vadd.f32 %v545_v62, %v251_v61 }
 0x289   :  { %v349_v2 = vpop.f32.mrf.mxu0 }
 0x28a   :  { %v369_v3 = vmin.f32 %v355_v0, 0.0  ;;  %v350_v4 = vadd.f32 %v349_v2, %v247_v63 }
 0x28b   :  { %v548_v6 = vpop.f32.mrf.mxu0 }
 0x28c   :  { %v368_v8 = vmin.f32 %v350_v4, 0.0  ;;  %v365_v9 = vadd.f32 %v548_v6, %v260_v60  ;;  %v374_v10 = vmul.f32 1.442695, %v369_v3 }
 0x28d   :  { %v359_v11 = vpop.f32.mrf.mxu0 }
 0x28e   :  { %v371_v12 = vmin.f32 %v365_v9, 0.0  ;;  %v360_v13 = vadd.f32 %v359_v11, %v255_v7  ;;  %v372_v14 = vmul.f32 1.442695, %v368_v8  ;;  %586 = vpow2.f32 %v374_v10 }
 0x290   :  { %v378_v15 = vmul.f32 1.442695, %v371_v12  ;;  %v370_v16 = vmin.f32 %v360_v13, 0.0 }
 0x292   :  { %588 = vpow2.f32 %v378_v15  ;;  %v376_v1 = vmul.f32 1.442695, %v370_v16 }
 0x293   :  { %590 = vpow2.f32 %v372_v14 }
 0x294   :  { %592 = vpow2.f32 %v376_v1 }
 0x29b   :  { %v587_v17 = vpop.eup %586 }
 0x29c   :  { %v494_v22 = vadd.f32 -1.0, %v587_v17 }
 0x29e   :  { %v385_v27 = vmax.f32 %v355_v0, %v494_v22 }
 0x29f   :  { %v589_v18 = vpop.eup %588 }
 0x2a0   :  { %v591_v19 = vpop.eup %590  ;;  %v496_v20 = vadd.f32 -1.0, %v589_v18 }
 0x2a1   :  { %v593_v21 = vpop.eup %592  ;;  %v493_v25 = vadd.f32 -1.0, %v591_v19 }
 0x2a2   :  { %v387_v23 = vmax.f32 %v365_v9, %v496_v20  ;;  %v495_v24 = vadd.f32 -1.0, %v593_v21 }
 0x2a3   :  { %v384_v28 = vmax.f32 %v350_v4, %v493_v25 }
 0x2a4   :  { %v386_v26 = vmax.f32 %v360_v13, %v495_v24  ;;  %550 = vmatpush3.msk.msra.mxu0 %vm397_vm7, %v387_v23 }
 0x2a5   :  { %551 = vmatprep.subr.mxu0 %v596_v5 }
 0x2a6   :  { %552 = vmatpush3.msra.mxu0 %v386_v26 }
 0x2a7   :  { %553 = vmatprep.subr.mxu0 %v596_v5 }
 0x2a8   :  { %554 = vmatpush3.msra.mxu0 %v385_v27 }
 0x2a9   :  { %555 = vmatprep.subr.mxu0 %v596_v5 }
 0x2aa   :  { %556 = vmatpush3.msra.mxu0 %v384_v28 }
 0x2ab   :  { %558 = vmatmul.mubr.msk.f32.vlgmr.msra.gmra.mxu0 %vm394_vm8, %v393_v29 }
 0x36b   :  { %v467_v31 = vpop.f32.mrf.mxu0 }
 0x36c   :  { %v468_v32 = vadd.f32 %v467_v31, %v390_v30 }
 0x36d   :  { %v559_v33 = vpop.f32.mrf.mxu0 }
 0x36e   :  { %471 = vst [vmem:[%s674_s2] sm:$0x1] %v468_v32 }

</bundles_post_ra>
